<compile_context>
chip_gen: v7x
topology: tpu7x:2x2x1
jax: 0.10.0
libtpu: 0.0.40
codegen_flags: <defaults>
</compile_context>

<pallas_src>
import numpy as np
import jax
import jax.numpy as jnp
from jax.experimental import pallas as pl
from jax.experimental.pallas import tpu as pltpu

POOL_K = 9


def _multiscale_kernel(x_ref, w1_ref, w2_ref, out_ref):
    """x_ref: (1, TC, L); w1/w2: (Lp1, L) one-hot upsample; out: (1, 4, TC, L)."""
    x = x_ref[0]                      # (TC, L) f32
    lp1 = w1_ref.shape[0]             # L - POOL_K + 1  (static)

    # Window-9, stride-1 pooling via 9 shifted views (pure VPU work).
    s = x[:, 0:lp1]
    m = x[:, 0:lp1]
    for k in range(1, POOL_K):
        v = x[:, k:k + lp1]
        s = s + v
        m = jnp.maximum(m, v)
    avg = s * (1.0 / POOL_K)          # (TC, Lp1)

    w1 = w1_ref[...]                  # stride-1 nearest-upsample selection
    w2 = w2_ref[...]                  # stride-9 nearest-upsample selection

    # Nearest upsample == exact one-hot selection matmul (MXU).  Grouped by
    # weight so consecutive matmuls reuse the pushed RHS.
    out_ref[0, 0, :, :] = jnp.dot(avg, w1, preferred_element_type=jnp.float32) + x
    out_ref[0, 2, :, :] = jnp.dot(m,   w1, preferred_element_type=jnp.float32) + x
    out_ref[0, 1, :, :] = jnp.dot(avg, w2, preferred_element_type=jnp.float32) + x
    out_ref[0, 3, :, :] = jnp.dot(m,   w2, preferred_element_type=jnp.float32) + x


def _pick_channel_tile(C, L):
    """Channels per block: a multiple of 8 that divides C when possible, sized
    so an f32 (TC, L) x-block is ~1 MiB.  Per grid step ~5 such blocks live
    (x + 4 output slabs); double-buffered that is ~10 MiB, well inside the
    scoped-VMEM budget of v5e/v6e (and v7x's smaller 64 MiB VMEM)."""
    if C % 8 != 0:
        return C
    budget_rows = max(8, (1 << 20) // (4 * L))
    tc = 8
    for cand in (16, 32, 64, 128, 256, 512):
        if C % cand == 0 and cand <= budget_rows:
            tc = cand
    return tc


def multiscale(x, size=None):
    """Pallas implementation of MultiScale.forward. x: (N, C, L) float32."""
    N, C, L = x.shape
    if size is None:
        size = L
    assert size == L, "residual add requires Upsample output size == L"
    assert L >= POOL_K, "sequence length must be >= pool kernel (9)"

    Lp1 = L - POOL_K + 1                     # stride-1 pool output length
    Lp2 = (L - POOL_K) // POOL_K + 1         # stride-9 pool output length

    # One-hot nearest-upsample selection matrices, built with numpy at trace
    # time (PyTorch nearest: src = floor(dst * Lin / Lout)).  The stride-9
    # pooled value j is the stride-1 pooled value at 9*j, so both weights
    # select out of the same stride-1 pooled sequence.
    i = np.arange(L)
    src1 = (i * Lp1) // L
    src2 = (i * Lp2) // L
    rows = np.arange(Lp1)[:, None]
    W1 = (rows == src1[None, :]).astype(np.float32)               # (Lp1, L)
    W2 = (rows == (POOL_K * src2)[None, :]).astype(np.float32)    # (Lp1, L)

    TC = _pick_channel_tile(C, L)
    grid = (N, C // TC)

    flops = 4 * 2 * N * C * Lp1 * L                     # four selection matmuls
    bytes_accessed = 4 * (5 * N * C * L + 2 * Lp1 * L)  # x in + 4 slabs out + weights

    out = pl.pallas_call(
        _multiscale_kernel,
        grid=grid,
        in_specs=[
            pl.BlockSpec((1, TC, L), lambda n, c: (n, c, 0)),
            pl.BlockSpec((Lp1, L), lambda n, c: (0, 0)),   # VMEM-resident weight
            pl.BlockSpec((Lp1, L), lambda n, c: (0, 0)),   # VMEM-resident weight
        ],
        out_specs=pl.BlockSpec((1, 4, TC, L), lambda n, c: (n, 0, c, 0)),
        out_shape=jax.ShapeDtypeStruct((N, 4, C, L), jnp.float32),
        compiler_params=pltpu.CompilerParams(
            dimension_semantics=("parallel", "parallel")),
        cost_estimate=pl.CostEstimate(
            flops=flops, transcendentals=0, bytes_accessed=bytes_accessed),
    )(x.astype(jnp.float32), jnp.asarray(W1), jnp.asarray(W2))

    # (N, 4, C, L) -> (N, 4C, L): pure reshape == torch.cat([...], dim=1).
    return out.reshape(N, 4 * C, L)


def _reference(x, size):
    """Pure-JAX reference mirroring the PyTorch module (sanity check)."""
    N, C, L = x.shape
    Lp1 = L - POOL_K + 1
    Lp2 = (L - POOL_K) // POOL_K + 1
    win = jnp.stack([x[:, :, k:k + Lp1] for k in range(POOL_K)], axis=-1)
    avg1, max1 = win.mean(-1), win.max(-1)
    avg2 = avg1[:, :, ::POOL_K][:, :, :Lp2]
    max2 = max1[:, :, ::POOL_K][:, :, :Lp2]
    idx = jnp.arange(size)
    up = lambda p: p[:, :, (idx * p.shape[-1]) // size]
    return jnp.concatenate(
        [up(avg1) + x, up(avg2) + x, up(max1) + x, up(max2) + x], axis=1)


if __name__ == "__main__":
    key = jax.random.PRNGKey(0)
    N, C, L = 2, 8, 128          # small NCL shapes; L lane-aligned (mult. of 128)
    x = jax.random.normal(key, (N, C, L), dtype=jnp.float32)

    out = multiscale(x)          # Upsample(size=None) -> size = L
    out = jax.block_until_ready(out)

    assert out.shape == (N, 4 * C, L), out.shape
    ref = _reference(x, L)
    err = float(jnp.max(jnp.abs(out - ref)))
    assert err < 1e-4, err

    print("KERNEL_OK")
</pallas_src>

<mosaic_0001>
module attributes {stable_mosaic.version = 11 : i64} {
  func.func @_multiscale_kernel(%arg0: i32, %arg1: i32, %arg2: memref<1x8x128xf32, #tpu.memory_space<vmem>>, %arg3: memref<120x128xf32, #tpu.memory_space<vmem>>, %arg4: memref<120x128xf32, #tpu.memory_space<vmem>>, %arg5: memref<1x4x8x128xf32, #tpu.memory_space<vmem>>) attributes {dimension_semantics = [#tpu.dimension_semantics<parallel>, #tpu.dimension_semantics<parallel>], iteration_bounds = array<i64: 2, 1>, scalar_prefetch = 0 : i64, scratch_operands = 0 : i64, tpu.core_type = #tpu.core_type<tc>, window_params = [{transform_indices = @transform_0, window_bounds = array<i64: 1, 8, 128>}, {pipeline_mode = #tpu.pipeline_mode<synchronous>, transform_indices = @transform_1, window_bounds = array<i64: 120, 128>}, {pipeline_mode = #tpu.pipeline_mode<synchronous>, transform_indices = @transform_2, window_bounds = array<i64: 120, 128>}, {transform_indices = @transform_3, window_bounds = array<i64: 1, 4, 8, 128>}]} {
    %c0 = arith.constant 0 : index
    %c0_0 = arith.constant 0 : index
    %c0_1 = arith.constant 0 : index
    %0 = vector.load %arg2[%c0, %c0_0, %c0_1] : memref<1x8x128xf32, #tpu.memory_space<vmem>>, vector<1x8x128xf32>
    %1 = vector.shape_cast %0 : vector<1x8x128xf32> to vector<8x128xf32>
    %2 = vector.extract_strided_slice %1 {offsets = [0, 0], sizes = [8, 120], strides = [1, 1]} : vector<8x128xf32> to vector<8x120xf32>
    %3 = vector.extract_strided_slice %1 {offsets = [0, 0], sizes = [8, 120], strides = [1, 1]} : vector<8x128xf32> to vector<8x120xf32>
    %4 = vector.extract_strided_slice %1 {offsets = [0, 1], sizes = [8, 120], strides = [1, 1]} : vector<8x128xf32> to vector<8x120xf32>
    %5 = arith.addf %2, %4 : vector<8x120xf32>
    %6 = arith.maximumf %3, %4 : vector<8x120xf32>
    %7 = vector.extract_strided_slice %1 {offsets = [0, 2], sizes = [8, 120], strides = [1, 1]} : vector<8x128xf32> to vector<8x120xf32>
    %8 = arith.addf %5, %7 : vector<8x120xf32>
    %9 = arith.maximumf %6, %7 : vector<8x120xf32>
    %10 = vector.extract_strided_slice %1 {offsets = [0, 3], sizes = [8, 120], strides = [1, 1]} : vector<8x128xf32> to vector<8x120xf32>
    %11 = arith.addf %8, %10 : vector<8x120xf32>
    %12 = arith.maximumf %9, %10 : vector<8x120xf32>
    %13 = vector.extract_strided_slice %1 {offsets = [0, 4], sizes = [8, 120], strides = [1, 1]} : vector<8x128xf32> to vector<8x120xf32>
    %14 = arith.addf %11, %13 : vector<8x120xf32>
    %15 = arith.maximumf %12, %13 : vector<8x120xf32>
    %16 = vector.extract_strided_slice %1 {offsets = [0, 5], sizes = [8, 120], strides = [1, 1]} : vector<8x128xf32> to vector<8x120xf32>
    %17 = arith.addf %14, %16 : vector<8x120xf32>
    %18 = arith.maximumf %15, %16 : vector<8x120xf32>
    %19 = vector.extract_strided_slice %1 {offsets = [0, 6], sizes = [8, 120], strides = [1, 1]} : vector<8x128xf32> to vector<8x120xf32>
    %20 = arith.addf %17, %19 : vector<8x120xf32>
    %21 = arith.maximumf %18, %19 : vector<8x120xf32>
    %22 = vector.extract_strided_slice %1 {offsets = [0, 7], sizes = [8, 120], strides = [1, 1]} : vector<8x128xf32> to vector<8x120xf32>
    %23 = arith.addf %20, %22 : vector<8x120xf32>
    %24 = arith.maximumf %21, %22 : vector<8x120xf32>
    %25 = vector.extract_strided_slice %1 {offsets = [0, 8], sizes = [8, 120], strides = [1, 1]} : vector<8x128xf32> to vector<8x120xf32>
    %26 = arith.addf %23, %25 : vector<8x120xf32>
    %27 = arith.maximumf %24, %25 : vector<8x120xf32>
    %cst = arith.constant 0.111111112 : f32
    %28 = vector.broadcast %cst : f32 to vector<8x120xf32>
    %29 = arith.mulf %26, %28 : vector<8x120xf32>
    %c0_2 = arith.constant 0 : index
    %c0_3 = arith.constant 0 : index
    %30 = vector.load %arg3[%c0_2, %c0_3] : memref<120x128xf32, #tpu.memory_space<vmem>>, vector<120x128xf32>
    %c0_4 = arith.constant 0 : index
    %c0_5 = arith.constant 0 : index
    %31 = vector.load %arg4[%c0_4, %c0_5] : memref<120x128xf32, #tpu.memory_space<vmem>>, vector<120x128xf32>
    %cst_6 = arith.constant dense<0.000000e+00> : vector<8x128xf32>
    %32 = tpu.matmul %29, %30, %cst_6 {dimension_numbers = #tpu.dot_dimension_numbers<[1], [0], [0], [1], [0, 0, 1, 1], [], []>} : vector<8x120xf32>, vector<120x128xf32>, vector<8x128xf32> -> vector<8x128xf32>
    %33 = arith.addf %32, %1 : vector<8x128xf32>
    %c0_7 = arith.constant 0 : index
    %c0_8 = arith.constant 0 : index
    %c0_9 = arith.constant 0 : index
    %c0_10 = arith.constant 0 : index
    %34 = vector.load %arg5[%c0_7, %c0_8, %c0_9, %c0_10] : memref<1x4x8x128xf32, #tpu.memory_space<vmem>>, vector<1x1x8x128xf32>
    %35 = vector.shape_cast %34 : vector<1x1x8x128xf32> to vector<8x128xf32>
    %36 = vector.shape_cast %33 : vector<8x128xf32> to vector<1x1x8x128xf32>
    tpu.vector_store %arg5[%c0_7, %c0_8, %c0_9, %c0_10], %36 {strides = array<i32>} : memref<1x4x8x128xf32, #tpu.memory_space<vmem>>, vector<1x1x8x128xf32>,
    %cst_11 = arith.constant dense<0.000000e+00> : vector<8x128xf32>
    %37 = tpu.matmul %27, %30, %cst_11 {dimension_numbers = #tpu.dot_dimension_numbers<[1], [0], [0], [1], [0, 0, 1, 1], [], []>} : vector<8x120xf32>, vector<120x128xf32>, vector<8x128xf32> -> vector<8x128xf32>
    %38 = arith.addf %37, %1 : vector<8x128xf32>
    %c0_12 = arith.constant 0 : index
    %c2 = arith.constant 2 : index
    %c0_13 = arith.constant 0 : index
    %c0_14 = arith.constant 0 : index
    %39 = vector.load %arg5[%c0_12, %c2, %c0_13, %c0_14] : memref<1x4x8x128xf32, #tpu.memory_space<vmem>>, vector<1x1x8x128xf32>
    %40 = vector.shape_cast %39 : vector<1x1x8x128xf32> to vector<8x128xf32>
    %41 = vector.shape_cast %38 : vector<8x128xf32> to vector<1x1x8x128xf32>
    tpu.vector_store %arg5[%c0_12, %c2, %c0_13, %c0_14], %41 {strides = array<i32>} : memref<1x4x8x128xf32, #tpu.memory_space<vmem>>, vector<1x1x8x128xf32>,
    %cst_15 = arith.constant dense<0.000000e+00> : vector<8x128xf32>
    %42 = tpu.matmul %29, %31, %cst_15 {dimension_numbers = #tpu.dot_dimension_numbers<[1], [0], [0], [1], [0, 0, 1, 1], [], []>} : vector<8x120xf32>, vector<120x128xf32>, vector<8x128xf32> -> vector<8x128xf32>
    %43 = arith.addf %42, %1 : vector<8x128xf32>
    %c0_16 = arith.constant 0 : index
    %c1 = arith.constant 1 : index
    %c0_17 = arith.constant 0 : index
    %c0_18 = arith.constant 0 : index
    %44 = vector.load %arg5[%c0_16, %c1, %c0_17, %c0_18] : memref<1x4x8x128xf32, #tpu.memory_space<vmem>>, vector<1x1x8x128xf32>
    %45 = vector.shape_cast %44 : vector<1x1x8x128xf32> to vector<8x128xf32>
    %46 = vector.shape_cast %43 : vector<8x128xf32> to vector<1x1x8x128xf32>
    tpu.vector_store %arg5[%c0_16, %c1, %c0_17, %c0_18], %46 {strides = array<i32>} : memref<1x4x8x128xf32, #tpu.memory_space<vmem>>, vector<1x1x8x128xf32>,
    %cst_19 = arith.constant dense<0.000000e+00> : vector<8x128xf32>
    %47 = tpu.matmul %27, %31, %cst_19 {dimension_numbers = #tpu.dot_dimension_numbers<[1], [0], [0], [1], [0, 0, 1, 1], [], []>} : vector<8x120xf32>, vector<120x128xf32>, vector<8x128xf32> -> vector<8x128xf32>
    %48 = arith.addf %47, %1 : vector<8x128xf32>
    %c0_20 = arith.constant 0 : index
    %c3 = arith.constant 3 : index
    %c0_21 = arith.constant 0 : index
    %c0_22 = arith.constant 0 : index
    %49 = vector.load %arg5[%c0_20, %c3, %c0_21, %c0_22] : memref<1x4x8x128xf32, #tpu.memory_space<vmem>>, vector<1x1x8x128xf32>
    %50 = vector.shape_cast %49 : vector<1x1x8x128xf32> to vector<8x128xf32>
    %51 = vector.shape_cast %48 : vector<8x128xf32> to vector<1x1x8x128xf32>
    tpu.vector_store %arg5[%c0_20, %c3, %c0_21, %c0_22], %51 {strides = array<i32>} : memref<1x4x8x128xf32, #tpu.memory_space<vmem>>, vector<1x1x8x128xf32>,
    return
  }
  func.func @transform_0(%arg0: i32, %arg1: i32) -> (i32, i32, i32) {
    %c0_i32 = arith.constant 0 : i32
    %c0_i32_0 = arith.constant 0 : i32
    return %arg0, %arg1, %c0_i32 : i32, i32, i32
  }
  func.func @transform_1(%arg0: i32, %arg1: i32) -> (i32, i32) {
    %c0_i32 = arith.constant 0 : i32
    %c0_i32_0 = arith.constant 0 : i32
    %c0_i32_1 = arith.constant 0 : i32
    return %c0_i32, %c0_i32_0 : i32, i32
  }
  func.func @transform_2(%arg0: i32, %arg1: i32) -> (i32, i32) {
    %c0_i32 = arith.constant 0 : i32
    %c0_i32_0 = arith.constant 0 : i32
    %c0_i32_1 = arith.constant 0 : i32
    return %c0_i32, %c0_i32_0 : i32, i32
  }
  func.func @transform_3(%arg0: i32, %arg1: i32) -> (i32, i32, i32, i32) {
    %c0_i32 = arith.constant 0 : i32
    %c0_i32_0 = arith.constant 0 : i32
    %c0_i32_1 = arith.constant 0 : i32
    return %arg0, %c0_i32, %arg1, %c0_i32_0 : i32, i32, i32, i32
  }
}

</mosaic_0001>

<bundles_post_ra>
// kernel: tpu_custom_call.1
= control target key start
LH: loop header
LB: loop body
LE: loop exit
PB: predicated region body
PF: predicated region fallthrough
CT: control target
= control target key end

     0   :  { %8 = vsyncpa [#allocation3], 0  ;;  %s1647_s0 = inlined_call_operand.hbm [shape: f32[2,8,128], index: 0, kind: input, shape index: {}]   ;;  %s1648_s1 = inlined_call_operand.hbm [shape: f32[120,128], index: 1, kind: input, shape index: {}]   ;;  %s1649_s2 = inlined_call_operand.hbm [shape: f32[120,128], index: 2, kind: input, shape index: {}]   ;;  %s1650_s3 = inlined_call_operand.hbm [shape: f32[2,4,8,128], index: 3, kind: output, shape index: {}]  }
   0x1   :  { %10 = vsyncpa [#allocation3 + $0x1], 0 }
   0x2   :  { %11 = vsyncpa [#allocation6], 0 }
   0x3   :  { %12 = vsyncpa [#allocation4], 0 }
   0x4   :  { %14 = vsyncpa [#allocation4 + $0x1], 0  ;;  %s1334_s12 = smov 0   ;;  %s1336_s13 = smov 0  }
   0x5   :  { %s1338_s14 = smov 0   ;;  %s1340_s15 = smov 0  }
   0x6   :  { %s1342_s16 = smov 0   ;;  %s1344_s17 = smov 0  }
   0x7 LB: > { %s717_s18 = sadd.s32 4294967295, %s1293_s17   ;;  %s718_s19 = sadd.s32 4294967294, %s1293_s17   ;;  %s1293_s17 = sphi %s1344_s17, %s20_s17   ;;  %s1289_s16 = sphi %s1342_s16, %s1672_s16   ;;  %s1285_s15 = sphi %s1340_s15, %s1671_s15   ;;  %s1281_s14 = sphi %s1338_s14, %s1670_s14   ;;  %s1277_s13 = sphi %s1336_s13, %s1669_s13   ;;  %s1273_s12 = sphi %s1334_s12, %s1668_s12  }
   0x8   : > { %p54_p0 = scmp.ne.s32.totalorder %s1277_s13, %s1273_s12  ;;  %p1368_p1 = scmp.eq.s32.totalorder %s717_s18, 0 }
   0x9   : > { %p1372_p2 = scmp.eq.s32.totalorder %s717_s18, 1  ;;  %p128_p3 = scmp.eq.s32.totalorder %s718_s19, 1 }
   0xa   : > { %s1655_s20 = scalar_select %p1368_p1, 1, 0 }
   0xb   : > { %p1378_p4 = por %p1368_p1, %p54_p0  ;;  %p719_p5 = scmp.ge.s32.totalorder %s1293_s17, 1 }
   0xc   : > { %p1383_p6 = por %p128_p3, %p54_p0  ;;  %p135_p7 = scmp.lt.s32.totalorder %s1293_s17, 3 }
   0xd   : > { %s1657_s22 = scalar_select %p1378_p4, 1, 0 }
   0xe   : > { %s1658_s23 = scalar_select %p1383_p6, 1, 0 }
   0xf   : > { %p1388_p8 = pnand %p719_p5, %p135_p7  ;;  %s1295_s25 = smov [#allocation5]  }
  0x10   : > { %s147_s26 = sshll.u32 %s1295_s25, 4  ;;  %s1296_s28 = smov [#allocation7]   ;;  %s1392_s26 = int_to_ptr.vmem [resolvable:$true] %s147_s26 }
  0x11   : > { %p1035_p9 = pneg %p1388_p8  ;;  %s160_s29 = sshll.u32 %s1296_s28, 4  ;;  %s1403_s29 = int_to_ptr.vmem [resolvable:$true] %s160_s29 }
  0x12   : > { %s1121_s5 = scalar_lea.hbm %s1648_s1, 1920 }
  0x13   : > { %p1399_p11 = pnand %p1035_p9, %p1368_p1  ;;  %p1122_p12 = scmp.ne.s32.totalorder %s1648_s1, %s1121_s5 }
  0x14   : > { %p1128_p5 = scmp.lt.u32.totalorder %s1121_s5, %s1648_s1 }
  0x15   : > { %p1123_p13 = pneg %p1399_p11 }
  0x17   : > { %p1124_p0 = pnand %p1123_p13, %p1122_p12 }
  0x19   : > { %p1125_p3 = pneg %p1124_p0 }
  0x1b   : > { %p1130_p7 = pnand %p1128_p5, %p1125_p3 }
  0x1d   : > { %1133 = shalt.err (!%p1130_p7)
}
  0x1e   : > { %s1134_s10 = scalar_lea.vmem %s1392_s26, 1920  ;;  %p1142_p1 = scmp.lt.s32.totalorder %s1392_s26, %s1392_s26 }
  0x1f   : > { %p1135_p9 = scmp.ne.s32.totalorder %s1392_s26, %s1134_s10  ;;  %p1143_p12 = scmp.lt.s32.totalorder %s1134_s10, %s1134_s10 }
  0x21   : > { %p1137_p10 = pnand %p1135_p9, %p1123_p13  ;;  %p1144_p0 = por %p1143_p12, %p1142_p1 }
  0x23   : > { %p1138_p6 = pneg %p1137_p10 }
  0x25   : > { %p1145_p4 = pnand %p1144_p0, %p1138_p6 }
  0x27   : > { %1148 = shalt.err (!%p1145_p4)
}
  0x28   : > { %s1297_s11 = smov 128   ;;  %s1298_s18 = smov 8  }
  0x29   : > { %1038 = dma.hbm_to_vmem [thread:$0]  (!%p1399_p11), %s1648_s1, 1920, %s1392_s26, [#allocation6], %s1297_s11, %s1297_s11, %s1298_s18  }
  0x2a   : > { %s1149_s4 = scalar_lea.hbm %s1649_s2, 1920 }
  0x2b   : > { %p1150_p1 = scmp.ne.s32.totalorder %s1649_s2, %s1149_s4  ;;  %p1156_p10 = scmp.lt.u32.totalorder %s1149_s4, %s1649_s2 }
  0x2d   : > { %p1152_p4 = pnand %p1150_p1, %p1123_p13 }
  0x2f   : > { %p1153_p6 = pneg %p1152_p4 }
  0x31   : > { %p1158_p3 = pnand %p1156_p10, %p1153_p6 }
  0x33   : > { %1161 = shalt.err (!%p1158_p3)
}
  0x34   : > { %s1162_s26 = scalar_lea.vmem %s1403_s29, 1920  ;;  %p1170_p12 = scmp.lt.s32.totalorder %s1403_s29, %s1403_s29 }
  0x35   : > { %p1163_p5 = scmp.ne.s32.totalorder %s1403_s29, %s1162_s26  ;;  %p1171_p0 = scmp.lt.s32.totalorder %s1162_s26, %s1162_s26 }
  0x37   : > { %p1165_p7 = pnand %p1163_p5, %p1123_p13  ;;  %p1172_p1 = por %p1171_p0, %p1170_p12 }
  0x39   : > { %p1166_p9 = pneg %p1165_p7 }
  0x3b   : > { %p1173_p4 = pnand %p1172_p1, %p1166_p9 }
  0x3d   : > { %1176 = shalt.err (!%p1173_p4)
}
  0x3e   : > { %1041 = dma.hbm_to_vmem [thread:$0]  (!%p1399_p11), %s1649_s2, 1920, %s1403_s29, [#allocation6], %s1297_s11, %s1297_s11, %s1298_s18  }
  0x3f   : > { %s32_s19 = sadd.s32 1, %s1289_s16  ;;  %s41_s25 = sadd.s32 1, %s1281_s14 }
  0x40   : > { %p34_p13 = scmp.ge.s32.totalorder %s32_s19, 2  ;;  %p48_p6 = scmp.ne.s32.totalorder %s1281_s14, %s1277_s13 }
  0x41   : > { %p49_p10 = scmp.eq.s32.totalorder %s1293_s17, 0  ;;  %p1052_p3 = scmp.lt.s32.totalorder %s1293_s17, 2 }
  0x42   : > { %s1674_s19 = smov (%p34_p13, %s32_s19), 0  ;;  %p1467_p7 = por %p1372_p2, %p48_p6 }
  0x43   : > { %p50_p5 = por %p49_p10, %p48_p6  ;;  %s36_s28 = ssub.s32 %s1289_s16, %s1674_s19 }
  0x44   : > { %s1661_s27 = scalar_select %p1467_p7, 1, 0 }
  0x45   : > { %s174_s30 = sand.u32 1, %s1281_s14   ;;  %p39_p9 = scmp.eq.s32.totalorder %s36_s28, 0 }
  0x46   : > { %s723_s29 = sshll.u32 %s174_s30, 3  ;;  %s724_s11 = sshll.u32 %s1289_s16, 7 }
  0x47   : > { %s1476_s18 = scalar_select %p39_p9, %s1281_s14, %s41_s25  }
  0x48   : > { %s1481_s6 = scalar_lea.hbm %s1647_s0, %s724_s11  ;;  %s178_s21 = scalar_lea.vmem [#allocation2], %s723_s29 }
  0x49   : > { %s186_s7 = sshll.u32 %s178_s21, 4  ;;  %p1485_p2 = pnand %p1052_p3, %p50_p5  ;;  %s1489_s7 = int_to_ptr.vmem [resolvable:$true] %s186_s7 }
  0x4a   : > { %s175_s26 = scalar_lea.sflag [#allocation3], %s174_s30  ;;  %s1177_s9 = scalar_lea.hbm %s1481_s6, 128 }
  0x4b   : > { %p1178_p11 = scmp.ne.s32.totalorder %s1481_s6, %s1177_s9  ;;  %p1179_p12 = pneg %p1485_p2 }
  0x4c   : > { %s1182_s28 = scalar_lea.hbm %s1647_s0, 256  ;;  %p1183_p4 = scmp.lt.u32.totalorder %s1481_s6, %s1647_s0 }
  0x4d   : > { %p1180_p0 = pnand %p1179_p12, %p1178_p11  ;;  %p1184_p13 = scmp.lt.u32.totalorder %s1182_s28, %s1177_s9 }
  0x4e   : > { %p1186_p10 = scmp.lt.u32.totalorder %s1177_s9, %s1481_s6 }
  0x4f   : > { %p1181_p1 = pneg %p1180_p0  ;;  %p1185_p6 = por %p1184_p13, %p1183_p4 }
  0x51   : > { %p1187_p3 = por %p1186_p10, %p1185_p6 }
  0x53   : > { %p1188_p5 = pnand %p1187_p3, %p1181_p1 }
  0x55   : > { %1191 = shalt.err (!%p1188_p5)
}
  0x56   : > { %s1192_s30 = scalar_lea.vmem %s1489_s7, 128  ;;  %s1299_s4 = smov [#allocation2]  }
  0x57   : > { %p1193_p9 = scmp.ne.s32.totalorder %s1489_s7, %s1192_s30  ;;  %s1197_s5 = sshll.u32 %s1299_s4, 4  ;;  %s1198_s5 = int_to_ptr.vmem [resolvable:$false] %s1197_s5 }
  0x58   : > { %s1199_s21 = scalar_lea.vmem %s1198_s5, 256  ;;  %p1200_p7 = scmp.lt.s32.totalorder %s1489_s7, %s1198_s5 }
  0x59   : > { %p1195_p11 = pnand %p1193_p9, %p1179_p12  ;;  %p1201_p4 = scmp.lt.s32.totalorder %s1199_s21, %s1192_s30 }
  0x5b   : > { %p1196_p0 = pneg %p1195_p11  ;;  %p1202_p13 = por %p1201_p4, %p1200_p7 }
  0x5d   : > { %p1203_p6 = pnand %p1202_p13, %p1196_p0 }
  0x5f   : > { %1206 = shalt.err (!%p1203_p6)
}
  0x60   : > { %1045 = dma.hbm_to_vmem [thread:$0]  (!%p1485_p2), %s1481_s6, 128, %s1489_s7, %s175_s26  }
  0x61   : > { %195 = sbr.rel (%p1388_p8) target bundleno = 504 (0x1f8), region = 32  ;;  %s1519_s9 = sand.u32 (!%p1388_p8), 1, %s1277_s13  }
  0x62   : > { %s726_s10 = sshll.u32 (!%p1388_p8), %s1519_s9, 3  ;;  %s198_s25 = scalar_lea.sflag (!%p1388_p8), [#allocation3], %s1519_s9 }
  0x63   : > { %s201_s28 = scalar_lea.vmem (!%p1388_p8), [#allocation2], %s726_s10  ;;  %p1663_p7 = scmp.ne.s32.totalorder (!%p1388_p8), %s1657_s22, 0 }
  0x68   : > { %1260 = dma.done.wait (%p1663_p7), %s198_s25, 128  }
  0x69   : > { %1262 = vsyncadd (%p1663_p7), %s198_s25, 4294967168  ;;  %p1664_p12 = scmp.ne.s32.totalorder %s1655_s20, 0 }
  0x6b   : > { %1264 = dma.done.wait (%p1664_p12), [#allocation6], 3840  }
  0x6c   : > { %1266 = vsyncadd (%p1664_p12), [#allocation6], 4294963456  ;;  %v1300_v0 = vmov 0.0|0.0   ;;  %v1533_v1 = vld [vmem:[%s201_s28] sm:$0xff]  ;;  %v275_v2 = vld [vmem:[#allocation5] sm:$0xff]  ;;  %s1301_s24 = smov 127  }
  0x6d   : > { %960 = vmatprep.subr.bf16.mxu1 %v1300_v0  ;;  %939 = vmatprep.subr.bf16.mxu0 %v1300_v0  ;;  %v276_v3 = vld [vmem:[#allocation5 + $0x8] sm:$0xff]  ;;  %s1302_s22 = smov 125   ;;  %v277_v5 = vld [vmem:[#allocation5 + $0x10] sm:$0xff]  ;;  %v278_v6 = vld [vmem:[#allocation5 + $0x18] sm:$0xff]  ;;  %s1303_s20 = smov 126   ;;  %vm1305_vm0 = vmmov 0  }
  0x6e   : > { %234 = vrot.lane.b32.xlu0 %v1533_v1, %s1301_s24  ;;  %244 = vrot.lane.b32.xlu1 %v1533_v1, %s1302_s22  ;;  %v940_v4 = vpack.c.bf16 %v276_v3, %v275_v2  ;;  %v943_v7 = vpack.c.bf16 %v278_v6, %v277_v5  ;;  %v279_v8 = vld [vmem:[#allocation5 + $0x20] sm:$0xff]  ;;  %v280_v9 = vld [vmem:[#allocation5 + $0x28] sm:$0xff]  ;;  %s1304_s6 = smov 124   ;;  %v1306_v10 = vmov 0.0   ;;  %v281_v12 = vld [vmem:[#allocation5 + $0x30] sm:$0xff]  ;;  %s1307_s7 = smov 123  }
  0x6f   : > { %870 = vmatprep.mubr.msk.f32.mxu1 %vm1305_vm0, %v1306_v10  ;;  %837 = vmatprep.mubr.msk.f32.mxu0 %vm1305_vm0, %v1306_v10  ;;  %v946_v11 = vpack.c.bf16 %v280_v9, %v279_v8  ;;  %v282_v13 = vld [vmem:[#allocation5 + $0x38] sm:$0xff]  ;;  %s1308_s8 = smov 122   ;;  %v283_v15 = vld [vmem:[#allocation5 + $0x40] sm:$0xff]  ;;  %v284_v16 = vld [vmem:[#allocation5 + $0x48] sm:$0xff]  ;;  %s1309_s26 = smov 121   ;;  %vm305_vm1 = vcmask 982016  }
  0x70   : > { %962 = vmatpush3.bf16.msra.mxu1 %v940_v4  ;;  %941 = vmatpush3.bf16.msra.mxu0 %v940_v4  ;;  %v949_v14 = vpack.c.bf16 %v282_v13, %v281_v12  ;;  %s1310_s29 = smov 120   ;;  %v952_v17 = vpack.c.bf16 %v284_v16, %v283_v15  ;;  %v285_v18 = vld [vmem:[#allocation5 + $0x50] sm:$0xff]  ;;  %v286_v19 = vld [vmem:[#allocation5 + $0x58] sm:$0xff]  ;;  %v287_v21 = vld [vmem:[#allocation5 + $0x60] sm:$0xff]  ;;  %s729_s11 = sshll.u32 %s1519_s9, 5 }
  0x71   : > { %963 = vmatprep.subr.bf16.mxu1 %v1300_v0  ;;  %942 = vmatprep.subr.bf16.mxu0 %v1300_v0  ;;  %v955_v20 = vpack.c.bf16 %v286_v19, %v285_v18  ;;  %v288_v22 = vld [vmem:[#allocation5 + $0x68] sm:$0xff]  ;;  %v289_v24 = vld [vmem:[#allocation5 + $0x70] sm:$0xff]  ;;  %v290_v44 = vld [vmem:[#allocation7] sm:$0xff]  ;;  %s231_s30 = scalar_lea.vmem [#allocation8], %s729_s11  ;;  %s742_s5 = sshll.u32 %s1285_s15, 9 }
  0x72   : > { %239 = vrot.lane.b32.xlu0 %v1533_v1, %s1303_s20  ;;  %249 = vrot.lane.b32.xlu1 %v1533_v1, %s1304_s6  ;;  %v958_v23 = vpack.c.bf16 %v288_v22, %v287_v21  ;;  %v291_v45 = vld [vmem:[#allocation7 + $0x8] sm:$0xff]  ;;  %v292_v52 = vld [vmem:[#allocation7 + $0x10] sm:$0xff]  ;;  %v293_v53 = vld [vmem:[#allocation7 + $0x18] sm:$0xff]  ;;  %s614_s4 = sshll.u32 %s231_s30, 4  ;;  %s1597_s25 = scalar_lea.hbm %s1650_s3, %s742_s5  ;;  %s1591_s4 = int_to_ptr.vmem [resolvable:$true] %s614_s4 }
  0x73   : > { %v982_v49 = vpack.c.bf16 %v291_v45, %v290_v44  ;;  %v985_v55 = vpack.c.bf16 %v293_v53, %v292_v52  ;;  %v294_v56 = vld [vmem:[#allocation7 + $0x20] sm:$0xff]  ;;  %v295_v57 = vld [vmem:[#allocation7 + $0x28] sm:$0xff]  ;;  %v296_v59 = vld [vmem:[#allocation7 + $0x30] sm:$0xff]  ;;  %s600_s15 = scalar_lea.sflag [#allocation4], %s1519_s9  ;;  %s1207_s28 = scalar_lea.vmem %s1591_s4, 512 }
  0x74   : > { %965 = vmatpush3.bf16.msra.mxu1 %v943_v7  ;;  %944 = vmatpush3.bf16.msra.mxu0 %v943_v7  ;;  %v988_v58 = vpack.c.bf16 %v295_v57, %v294_v56  ;;  %v297_v60 = vld [vmem:[#allocation7 + $0x38] sm:$0xff]  ;;  %v298_v62 = vld [vmem:[#allocation7 + $0x40] sm:$0xff]  ;;  %v299_v63 = vld [vmem:[#allocation7 + $0x48] sm:$0xff]  ;;  %p1208_p8 = scmp.ne.s32.totalorder %s1591_s4, %s1207_s28  ;;  %p1665_p2 = scmp.ne.s32.totalorder %s1661_s27, 0 }
  0x75   : > { %966 = vmatprep.subr.bf16.mxu1 %v1300_v0  ;;  %945 = vmatprep.subr.bf16.mxu0 %v1300_v0  ;;  %v991_v61 = vpack.c.bf16 %v297_v60, %v296_v59  ;;  %v994_v2 = vpack.c.bf16 %v299_v63, %v298_v62  ;;  %v300_v3 = vld [vmem:[#allocation7 + $0x50] sm:$0xff]  ;;  %v301_v4 = vld [vmem:[#allocation7 + $0x58] sm:$0xff]  ;;  %v302_v6 = vld [vmem:[#allocation7 + $0x60] sm:$0xff]  ;;  %s1311_s24 = smov [#allocation8]  }
  0x76   : > { %254 = vrot.lane.b32.xlu0 %v1533_v1, %s1307_s7  ;;  %259 = vrot.lane.b32.xlu1 %v1533_v1, %s1308_s8  ;;  %v997_v5 = vpack.c.bf16 %v301_v4, %v300_v3  ;;  %v303_v7 = vld [vmem:[#allocation7 + $0x68] sm:$0xff]  ;;  %v304_v9 = vld [vmem:[#allocation7 + $0x70] sm:$0xff]  ;;  %p1209_p1 = pnand %p1208_p8, %p1665_p2  ;;  %s1211_s22 = sshll.u32 %s1311_s24, 4  ;;  %s1212_s22 = int_to_ptr.vmem [resolvable:$false] %s1211_s22 }
  0x77   : > { %v1000_v8 = vpack.c.bf16 %v303_v7, %v302_v6  ;;  %s1213_s20 = scalar_lea.vmem %s1212_s22, 1024  ;;  %p1214_p3 = scmp.lt.s32.totalorder %s1591_s4, %s1212_s22 }
  0x78   : > { %968 = vmatpush3.bf16.msra.mxu1 %v946_v11  ;;  %947 = vmatpush3.bf16.msra.mxu0 %v946_v11  ;;  %p1210_p10 = pneg %p1209_p1  ;;  %p1215_p5 = scmp.lt.s32.totalorder %s1213_s20, %s1207_s28 }
  0x79   : > { %969 = vmatprep.subr.bf16.mxu1 %v1300_v0  ;;  %948 = vmatprep.subr.bf16.mxu0 %v1300_v0 }
  0x7a   : > { %264 = vrot.lane.b32.xlu0 %v1533_v1, %s1309_s26  ;;  %269 = vrot.lane.b32.xlu1 %v1533_v1, %s1310_s29  ;;  %p1216_p9 = por %p1215_p5, %p1214_p3 }
  0x7c   : > { %971 = vmatpush3.bf16.msra.mxu1 %v949_v14  ;;  %950 = vmatpush3.bf16.msra.mxu0 %v949_v14  ;;  %p1217_p11 = pnand %p1216_p9, %p1210_p10 }
  0x7d   : > { %972 = vmatprep.subr.bf16.mxu1 %v1300_v0  ;;  %951 = vmatprep.subr.bf16.mxu0 %v1300_v0 }
  0x80   : > { %974 = vmatpush3.bf16.msra.mxu1 %v952_v17  ;;  %953 = vmatpush3.bf16.msra.mxu0 %v952_v17 }
  0x81   : > { %975 = vmatprep.subr.bf16.mxu1 %v1300_v0  ;;  %954 = vmatprep.subr.bf16.mxu0 %v1300_v0 }
  0x84   : > { %977 = vmatpush3.bf16.msra.mxu1 %v955_v20  ;;  %956 = vmatpush3.bf16.msra.mxu0 %v955_v20 }
  0x85   : > { %978 = vmatprep.subr.bf16.mxu1 %v1300_v0  ;;  %957 = vmatprep.subr.bf16.mxu0 %v1300_v0 }
  0x88   : > { %980 = vmatpush3.bf16.msra.mxu1 %v958_v23  ;;  %959 = vmatpush3.bf16.msra.mxu0 %v958_v23 }
  0x89   : > { %868 = vmatprep.subr.mxu1 %v1306_v10  ;;  %835 = vmatprep.subr.mxu0 %v1306_v10 }
  0x8c   : > { %869 = vmatpush3.msra.mxu1 %v289_v24  ;;  %836 = vmatpush3.msra.mxu0 %v289_v24 }
  0x8d   : > { %1002 = vmatprep.subr.bf16.mxu1 %v1300_v0  ;;  %981 = vmatprep.subr.bf16.mxu0 %v1300_v0 }
  0xe0   : > { %v235_v25 = vpop.permute.xlu0 %234  ;;  %v245_v26 = vpop.permute.xlu1 %244 }
  0xe1   : > { %v237_v27 = vadd.f32 %v235_v25, %v1533_v1  ;;  %v238_v28 = vmax.f32 %v1533_v1, %v235_v25 }
  0xe4   : > { %v240_v29 = vpop.permute.xlu0 %239  ;;  %v250_v30 = vpop.permute.xlu1 %249 }
  0xe5   : > { %v242_v31 = vadd.f32 %v240_v29, %v237_v27  ;;  %v243_v32 = vmax.f32 %v238_v28, %v240_v29 }
  0xe7   : > { %v247_v33 = vadd.f32 %v245_v26, %v242_v31  ;;  %v248_v34 = vmax.f32 %v243_v32, %v245_v26 }
  0xe8   : > { %v255_v35 = vpop.permute.xlu0 %254  ;;  %v260_v36 = vpop.permute.xlu1 %259 }
  0xe9   : > { %v252_v37 = vadd.f32 %v250_v30, %v247_v33  ;;  %v253_v38 = vmax.f32 %v248_v34, %v250_v30 }
  0xeb   : > { %v257_v39 = vadd.f32 %v255_v35, %v252_v37  ;;  %v258_v40 = vmax.f32 %v253_v38, %v255_v35 }
  0xec   : > { %v265_v41 = vpop.permute.xlu0 %264  ;;  %v270_v46 = vpop.permute.xlu1 %269 }
  0xed   : > { %v262_v42 = vadd.f32 %v260_v36, %v257_v39  ;;  %v263_v43 = vmax.f32 %v258_v40, %v260_v36 }
  0xef   : > { %v267_v47 = vadd.f32 %v265_v41, %v262_v42  ;;  %v268_v48 = vmax.f32 %v263_v43, %v265_v41 }
  0xf1   : > { %v272_v50 = vadd.f32 %v270_v46, %v267_v47  ;;  %v273_v51 = vmax.f32 %v268_v48, %v270_v46 }
  0xf3   : > { %v274_v54 = vmul.f32 0.11111111, %v272_v50  ;;  %871 = vmatmul.mubr.msk.f32.vlgmr.msra.gmra.mrb[0].mxu1 %vm305_vm1, %v273_v51 }
  0xf4   : > { %1004 = vmatpush3.bf16.msra.mxu1 %v982_v49  ;;  %936 = vmatprep.mubr.msk.f32.mxu1 %vm1305_vm0, %v1306_v10 }
  0xf5   : > { %838 = vmatmul.mubr.msk.f32.vlgmr.msra.gmra.mrb[0].mxu0 %vm305_vm1, %v274_v54  ;;  %1005 = vmatprep.subr.bf16.mxu1 %v1300_v0 }
  0xf6   : > { %983 = vmatpush3.bf16.msra.mxu0 %v982_v49  ;;  %903 = vmatprep.mubr.msk.f32.mxu0 %vm1305_vm0, %v1306_v10 }
  0xf7   : > { %984 = vmatprep.subr.bf16.mxu0 %v1300_v0 }
  0xf8   : > { %1007 = vmatpush3.bf16.msra.mxu1 %v985_v55 }
  0xf9   : > { %1008 = vmatprep.subr.bf16.mxu1 %v1300_v0 }
  0xfa   : > { %986 = vmatpush3.bf16.msra.mxu0 %v985_v55 }
  0xfb   : > { %987 = vmatprep.subr.bf16.mxu0 %v1300_v0 }
  0xfc   : > { %1010 = vmatpush3.bf16.msra.mxu1 %v988_v58 }
  0xfd   : > { %1011 = vmatprep.subr.bf16.mxu1 %v1300_v0 }
  0xfe   : > { %989 = vmatpush3.bf16.msra.mxu0 %v988_v58 }
  0xff   : > { %990 = vmatprep.subr.bf16.mxu0 %v1300_v0 }
 0x100   : > { %1013 = vmatpush3.bf16.msra.mxu1 %v991_v61 }
 0x101   : > { %1014 = vmatprep.subr.bf16.mxu1 %v1300_v0 }
 0x102   : > { %992 = vmatpush3.bf16.msra.mxu0 %v991_v61 }
 0x103   : > { %993 = vmatprep.subr.bf16.mxu0 %v1300_v0 }
 0x104   : > { %1016 = vmatpush3.bf16.msra.mxu1 %v994_v2 }
 0x105   : > { %1017 = vmatprep.subr.bf16.mxu1 %v1300_v0 }
 0x106   : > { %995 = vmatpush3.bf16.msra.mxu0 %v994_v2 }
 0x107   : > { %996 = vmatprep.subr.bf16.mxu0 %v1300_v0 }
 0x108   : > { %1019 = vmatpush3.bf16.msra.mxu1 %v997_v5 }
 0x109   : > { %1020 = vmatprep.subr.bf16.mxu1 %v1300_v0 }
 0x10a   : > { %998 = vmatpush3.bf16.msra.mxu0 %v997_v5 }
 0x10b   : > { %999 = vmatprep.subr.bf16.mxu0 %v1300_v0 }
 0x10c   : > { %1022 = vmatpush3.bf16.msra.mxu1 %v1000_v8 }
 0x10d   : > { %934 = vmatprep.subr.mxu1 %v1306_v10 }
 0x10e   : > { %1001 = vmatpush3.bf16.msra.mxu0 %v1000_v8 }
 0x10f   : > { %901 = vmatprep.subr.mxu0 %v1306_v10 }
 0x110   : > { %935 = vmatpush3.msra.mxu1 %v304_v9 }
 0x111   : > { %937 = vmatmul.mubr.msk.f32.vlgmr.msra.gmra.mrb[2].mxu1 %vm305_vm1, %v273_v51 }
 0x112   : > { %902 = vmatpush3.msra.mxu0 %v304_v9 }
 0x113   : > { %904 = vmatmul.mubr.msk.f32.vlgmr.msra.gmra.mrb[2].mxu0 %vm305_vm1, %v274_v54 }
 0x1c6   : > { %v449_v11 = vpop.f32.mrb[0].mxu1 }
 0x1c7   : > { %v450_v12 = vadd.f32 %v449_v11, %v1533_v1  ;;  %v872_v13 = vpop.f32.mrb[1].mxu1 }
 0x1c8   : > { %v375_v0 = vpop.f32.mrb[0].mxu0 }
 0x1c9   : > { %732 = vst [vmem:[%s231_s30 + $0x10] sm:$0xff] %v450_v12  ;;  %v376_v14 = vadd.f32 %v375_v0, %v1533_v1  ;;  %v839_v15 = vpop.f32.mrb[1].mxu0 }
 0x1cb   : > { %379 = vst [vmem:[%s231_s30] sm:$0xff] %v376_v14 }
 0x1e4   : > { %v593_v10 = vpop.f32.mrb[2].mxu1 }
 0x1e5   : > { %v594_v16 = vadd.f32 %v593_v10, %v1533_v1  ;;  %v938_v17 = vpop.f32.mrb[3].mxu1 }
 0x1e6   : > { %v521_v18 = vpop.f32.mrb[2].mxu0 }
 0x1e7   : > { %736 = vst [vmem:[%s231_s30 + $0x18] sm:$0xff] %v594_v16  ;;  %v522_v19 = vadd.f32 %v521_v18, %v1533_v1  ;;  %v905_v20 = vpop.f32.mrb[3].mxu0 }
 0x1e9   : > { %734 = vst [vmem:[%s231_s30 + $0x8] sm:$0xff] %v522_v19 }
 0x1ea   : > { %1220 = shalt.err (!%p1217_p11)
}
 0x1eb   : > { %s1221_s6 = scalar_lea.hbm %s1597_s25, 512  ;;  %s1225_s26 = scalar_lea.hbm %s1650_s3, 1024 }
 0x1ec   : > { %p1222_p0 = scmp.ne.s32.totalorder %s1597_s25, %s1221_s6  ;;  %p1226_p6 = scmp.lt.u32.totalorder %s1597_s25, %s1650_s3 }
 0x1ed   : > { %p1227_p7 = scmp.lt.u32.totalorder %s1225_s26, %s1221_s6  ;;  %p1229_p8 = scmp.lt.u32.totalorder %s1221_s6, %s1597_s25 }
 0x1ee   : > { %p1223_p4 = pnand %p1222_p0, %p1665_p2 }
 0x1ef   : > { %p1228_p12 = por %p1227_p7, %p1226_p6 }
 0x1f0   : > { %p1224_p13 = pneg %p1223_p4 }
 0x1f1   : > { %p1230_p1 = por %p1229_p8, %p1228_p12 }
 0x1f3   : > { %p1231_p10 = pnand %p1230_p1, %p1224_p13 }
 0x1f5   : > { %1234 = shalt.err (!%p1231_p10)
}
 0x1f6   : > { %s1312_s30 = smov 128   ;;  %s1313_s5 = smov 8  }
 0x1f7   : > { %1033 = dma.vmem_to_hbm [thread:$0]  (%p1665_p2), %s1591_s4, 512, %s1597_s25, %s600_s15, %s1312_s30, %s1312_s30, %s1313_s5  }
 0x1f8 PF: > { %s629_s21 = sand.u32 1, %s1273_s12   ;;  %p1666_p3 = scmp.ne.s32.totalorder %s1658_s23, 0 }
 0x1f9   : > { %p1667_p5 = scmp.ge.s32.totalorder %s1293_s17, 2  ;;  %s630_s10 = scalar_lea.sflag [#allocation4], %s629_s21 }
 0x1fb   : > { %p1047_p9 = pnand %p1667_p5, %p1666_p3 }
 0x1fd   : > { %1268 = dma.done.wait (!%p1047_p9), %s630_s10, 512  }
 0x1fe   : > { %1270 = vsyncadd (!%p1047_p9), %s630_s10, 4294966784  ;;  %s20_s17 = sadd.s32 1, %s1293_s17   ;;  %s1668_s12 = smov %s1277_s13 }
 0x1ff   : > { %p17_p11 = scmp.ge.s32.totalorder %s20_s17, 4   ;;  %s1669_s13 = smov %s1281_s14 }
 0x200   : > { %s1670_s14 = smov %s1476_s18  ;;  %s1671_s15 = smov %s1289_s16 }
 0x201   : > { %s1672_s16 = smov %s1674_s19  ;;  %19 = sbr.rel (!%p17_p11) target bundleno = 7 (0x7), region = 88 }
 0x208   :  { %635 = vsyncpa [#allocation3], 1 }
 0x209   :  { %637 = vsyncpa [#allocation3 + $0x1], 1 }
 0x20a   :  { %638 = vsyncpa [#allocation6], 1 }
 0x20b   :  { %639 = vsyncpa [#allocation4], 1 }
 0x20c   :  { %641 = vsyncpa [#allocation4 + $0x1], 1 }

</bundles_post_ra>
